<compile_context>
chip_gen: v7x
topology: tpu7x:2x2x1
jax: 0.10.0
libtpu: 0.0.40
codegen_flags: <defaults>
</compile_context>

<pallas_src>
import math

import jax
import jax.numpy as jnp
from jax.experimental import pallas as pl
from jax.experimental.pallas import tpu as pltpu


# ----------------------------- in-kernel math ------------------------------

def _gelu_exact(h):
    # PyTorch nn.GELU() default: exact erf formulation.
    return 0.5 * h * (1.0 + jax.lax.erf(h * (1.0 / math.sqrt(2.0))))


def _layernorm(h, gamma, beta, eps=1e-5):
    mu = jnp.mean(h, axis=-1, keepdims=True)
    var = jnp.mean((h - mu) ** 2, axis=-1, keepdims=True)
    return (h - mu) * jax.lax.rsqrt(var + eps) * gamma + beta


# ----------------------------- Pallas kernel -------------------------------

def skewed_output_kernel(x_ref, w1_ref, w2_ref, aux_ref, out_ref):
    # x stays in its input dtype (bf16 path supported); accumulate in f32.
    x = x_ref[...]

    aux = aux_ref[...].astype(jnp.float32)   # (4, 28)
    b1 = aux[0:1, :]                        # fused first-layer bias   (1, 28)
    gamma = aux[1:2, :]                     # LN gamma (padded w/ ones)(1, 28)
    beta = aux[2:3, :]                      # LN beta  (padded w/ 0s)  (1, 28)
    b2 = aux[3:4, 0:8]                      # fused second-layer bias  (1, 8)

    # ---- fused first projection: one MXU pass for all three heads ----
    h = jnp.dot(x, w1_ref[...], preferred_element_type=jnp.float32) + b1   # (tb, 28)

    # per-head activations (LayerNorm only over each head's own lanes)
    a_n = _gelu_exact(_layernorm(h[:, 0:16], gamma[:, 0:16], beta[:, 0:16]))   # (tb, 16)
    a_e = _gelu_exact(_layernorm(h[:, 16:24], gamma[:, 16:24], beta[:, 16:24]))  # (tb, 8)
    a_g = _gelu_exact(h[:, 24:28])                                             # (tb, 4)
    act = jnp.concatenate([a_n, a_e, a_g], axis=1)                             # (tb, 28)

    # ---- fused second projection: block-diagonal (28, 8) weight ----
    raw = jnp.dot(act, w2_ref[...].astype(jnp.float32),
                  preferred_element_type=jnp.float32) + b2                     # (tb, 8)

    # cols 0:2 -> normal (linear), cols 2:4 -> extreme (sigmoid),
    # cols 4:6 -> gate (sigmoid), cols 6:8 -> padding (left as-is, == 0)
    col = jax.lax.broadcasted_iota(jnp.int32, raw.shape, 1)
    out = jnp.where((col >= 2) & (col < 6), jax.nn.sigmoid(raw), raw)
    out_ref[...] = out.astype(out_ref.dtype)


# ------------------------------ wrapper -------------------------------------

def _round_up(n, m):
    return ((n + m - 1) // m) * m


def _pack_params(params, x_dtype):
    """Fuse the 16 per-head parameters into 3 kernel inputs."""
    f32 = jnp.float32
    # fused first-layer weight (F, 28): [normal 16 | extreme 8 | gate 4]
    w1 = jnp.concatenate([params["nw1"], params["ew1"], params["gw1"]], axis=1)
    b1 = jnp.concatenate([params["nb1"], params["eb1"], params["gb1"]], axis=1)   # (1, 28)

    # block-diagonal fused second-layer weight (28, 8); cols 6:8 are zero padding
    w2 = jnp.zeros((28, 8), f32)
    w2 = w2.at[0:16, 0:2].set(params["nw2"])
    w2 = w2.at[16:24, 2:4].set(params["ew2"])
    w2 = w2.at[24:28, 4:6].set(params["gw2"])
    b2 = jnp.concatenate(
        [params["nb2"], params["eb2"], params["gb2"], jnp.zeros((1, 2), f32)], axis=1)  # (1, 8)

    gamma = jnp.concatenate([params["ng"], params["eg"], jnp.ones((1, 4), f32)], axis=1)
    beta = jnp.concatenate([params["nbt"], params["ebt"], jnp.zeros((1, 4), f32)], axis=1)

    aux = jnp.concatenate(
        [b1, gamma, beta,
         jnp.concatenate([b2, jnp.zeros((1, 20), f32)], axis=1)], axis=0)      # (4, 28)

    return w1.astype(x_dtype), w2, aux.astype(f32)


def skewed_output_layer(x, params, *, tile_b=None):
    """x: (B, F).  Returns (normal_out, extreme_out, gate_weight), each (B, 2) f32."""
    B, F = x.shape

    # --- pick a large, VMEM-budgeted batch tile (multiple of 8 sublanes) ---
    if tile_b is None:
        bytes_per_row = F * jnp.dtype(x.dtype).itemsize
        # keep the double-buffered x tile under ~12 MiB (safe for v5e 16 MiB scoped,
        # v6e 32 MiB, v7x ~32 MiB scoped / 64 MiB physical)
        cap_rows = max(8, (12 * 1024 * 1024) // (2 * bytes_per_row))
        tile_b = min(1024, cap_rows, _round_up(B, 8))
    tile_b = max(8, (tile_b // 8) * 8)

    # --- pad batch so the grid divides evenly (padded rows sliced off below) ---
    B_pad = _round_up(B, tile_b)
    if B_pad != B:
        x = jnp.pad(x, ((0, B_pad - B), (0, 0)))

    w1, w2, aux = _pack_params(params, x.dtype)

    x_spec = pl.BlockSpec((tile_b, F), lambda i: (i, 0))
    w1_spec = pl.BlockSpec((F, 28), lambda i: (0, 0))
    w2_spec = pl.BlockSpec((28, 8), lambda i: (0, 0))
    aux_spec = pl.BlockSpec((4, 28), lambda i: (0, 0))
    out_spec = pl.BlockSpec((tile_b, 8), lambda i: (i, 0))

    fused = pl.pallas_call(
        skewed_output_kernel,
        out_shape=jax.ShapeDtypeStruct((B_pad, 8), jnp.float32),
        grid_spec=pltpu.PrefetchScalarGridSpec(
            num_scalar_prefetch=0,
            grid=(B_pad // tile_b,),
            in_specs=[x_spec, w1_spec, w2_spec, aux_spec],
            out_specs=out_spec,
        ),
        compiler_params=pltpu.CompilerParams(
            dimension_semantics=("parallel",),
        ),
    )(x, w1, w2, aux)

    normal_out = fused[:B, 0:2]
    extreme_out = fused[:B, 2:4]
    gate_weight = fused[:B, 4:6]
    return normal_out, extreme_out, gate_weight


# -------------------------- deterministic init ------------------------------

def init_params(key, in_features):
    """Synthetic init mirroring the PyTorch module's shapes.

    Linear weights are stored as (in, out) so the kernel computes x @ W + b.
    Biases / LayerNorm params are kept 2-D (1, out).
    """
    def linear(key, fan_in, fan_out):
        kw, kb = jax.random.split(key)
        bound = 1.0 / math.sqrt(fan_in)
        w = jax.random.uniform(kw, (fan_in, fan_out), jnp.float32, -bound, bound)
        b = jax.random.uniform(kb, (1, fan_out), jnp.float32, -bound, bound)
        return w, b

    keys = jax.random.split(key, 6)
    params = {}

    params["nw1"], params["nb1"] = linear(keys[0], in_features, 16)
    params["ng"] = jnp.ones((1, 16), jnp.float32)
    params["nbt"] = jnp.zeros((1, 16), jnp.float32)
    params["nw2"], params["nb2"] = linear(keys[1], 16, 2)

    params["ew1"], params["eb1"] = linear(keys[2], in_features, 8)
    params["eg"] = jnp.ones((1, 8), jnp.float32)
    params["ebt"] = jnp.zeros((1, 8), jnp.float32)
    params["ew2"], params["eb2"] = linear(keys[3], 8, 2)

    params["gw1"], params["gb1"] = linear(keys[4], in_features, 4)
    params["gw2"], params["gb2"] = linear(keys[5], 4, 2)

    return params


# ------------------------------ reference -----------------------------------

def reference(x, params):
    def lin(h, w, b):
        return h @ w + b

    def ln(h, g, b, eps=1e-5):
        mu = h.mean(-1, keepdims=True)
        var = ((h - mu) ** 2).mean(-1, keepdims=True)
        return (h - mu) / jnp.sqrt(var + eps) * g + b

    gelu = lambda h: 0.5 * h * (1.0 + jax.lax.erf(h / math.sqrt(2.0)))

    n = lin(gelu(ln(lin(x, params["nw1"], params["nb1"]), params["ng"], params["nbt"])),
            params["nw2"], params["nb2"])
    e = jax.nn.sigmoid(
        lin(gelu(ln(lin(x, params["ew1"], params["eb1"]), params["eg"], params["ebt"])),
            params["ew2"], params["eb2"]))
    g = jax.nn.sigmoid(
        lin(gelu(lin(x, params["gw1"], params["gb1"])), params["gw2"], params["gb2"]))
    return n, e, g


# --------------------------------- main -------------------------------------

if __name__ == "__main__":
    key = jax.random.PRNGKey(0)
    k_x, k_p = jax.random.split(key)

    batch, in_features = 20, 32          # non-multiple-of-tile batch exercises padding path
    x = jax.random.normal(k_x, (batch, in_features), jnp.float32)
    params = init_params(k_p, in_features)

    normal_out, extreme_out, gate_weight = skewed_output_layer(x, params)
    jax.block_until_ready((normal_out, extreme_out, gate_weight))

    assert normal_out.shape == (batch, 2)
    assert extreme_out.shape == (batch, 2)
    assert gate_weight.shape == (batch, 2)

    # correctness check against a pure-JAX reference (loose tol: MXU f32 matmul passes)
    rn, re, rg = reference(x, params)
    assert jnp.allclose(normal_out, rn, rtol=2e-2, atol=2e-2)
    assert jnp.allclose(extreme_out, re, rtol=2e-2, atol=2e-2)
    assert jnp.allclose(gate_weight, rg, rtol=2e-2, atol=2e-2)

    print("KERNEL_OK")
</pallas_src>

<mosaic_0001>
module attributes {stable_mosaic.version = 11 : i64} {
  func.func @skewed_output_kernel(%arg0: i32, %arg1: memref<24x32xf32, #tpu.memory_space<vmem>>, %arg2: memref<32x28xf32, #tpu.memory_space<vmem>>, %arg3: memref<28x8xf32, #tpu.memory_space<vmem>>, %arg4: memref<4x28xf32, #tpu.memory_space<vmem>>, %arg5: memref<24x8xf32, #tpu.memory_space<vmem>>) attributes {dimension_semantics = [#tpu.dimension_semantics<parallel>], iteration_bounds = array<i64: 1>, scalar_prefetch = 0 : i64, scratch_operands = 0 : i64, tpu.core_type = #tpu.core_type<tc>, window_params = [{transform_indices = @transform_0, window_bounds = array<i64: 24, 32>}, {pipeline_mode = #tpu.pipeline_mode<synchronous>, transform_indices = @transform_1, window_bounds = array<i64: 32, 28>}, {pipeline_mode = #tpu.pipeline_mode<synchronous>, transform_indices = @transform_2, window_bounds = array<i64: 28, 8>}, {pipeline_mode = #tpu.pipeline_mode<synchronous>, transform_indices = @transform_3, window_bounds = array<i64: 4, 28>}, {transform_indices = @transform_4, window_bounds = array<i64: 24, 8>}]} {
    %c0 = arith.constant 0 : index
    %c0_0 = arith.constant 0 : index
    %0 = vector.load %arg1[%c0, %c0_0] : memref<24x32xf32, #tpu.memory_space<vmem>>, vector<24x32xf32>
    %c0_1 = arith.constant 0 : index
    %c0_2 = arith.constant 0 : index
    %1 = vector.load %arg4[%c0_1, %c0_2] : memref<4x28xf32, #tpu.memory_space<vmem>>, vector<4x28xf32>
    %2 = vector.extract_strided_slice %1 {offsets = [0, 0], sizes = [1, 28], strides = [1, 1]} : vector<4x28xf32> to vector<1x28xf32>
    %3 = vector.extract_strided_slice %1 {offsets = [1, 0], sizes = [1, 28], strides = [1, 1]} : vector<4x28xf32> to vector<1x28xf32>
    %4 = vector.extract_strided_slice %1 {offsets = [2, 0], sizes = [1, 28], strides = [1, 1]} : vector<4x28xf32> to vector<1x28xf32>
    %5 = vector.extract_strided_slice %1 {offsets = [3, 0], sizes = [1, 8], strides = [1, 1]} : vector<4x28xf32> to vector<1x8xf32>
    %c0_3 = arith.constant 0 : index
    %c0_4 = arith.constant 0 : index
    %6 = vector.load %arg2[%c0_3, %c0_4] : memref<32x28xf32, #tpu.memory_space<vmem>>, vector<32x28xf32>
    %cst = arith.constant dense<0.000000e+00> : vector<24x28xf32>
    %7 = tpu.matmul %0, %6, %cst {dimension_numbers = #tpu.dot_dimension_numbers<[1], [0], [0], [1], [0, 0, 1, 1], [], []>} : vector<24x32xf32>, vector<32x28xf32>, vector<24x28xf32> -> vector<24x28xf32>
    %8 = vector.broadcast %2 : vector<1x28xf32> to vector<24x28xf32>
    %9 = arith.addf %7, %8 : vector<24x28xf32>
    %10 = vector.extract_strided_slice %9 {offsets = [0, 0], sizes = [24, 16], strides = [1, 1]} : vector<24x28xf32> to vector<24x16xf32>
    %11 = vector.extract_strided_slice %3 {offsets = [0, 0], sizes = [1, 16], strides = [1, 1]} : vector<1x28xf32> to vector<1x16xf32>
    %12 = vector.extract_strided_slice %4 {offsets = [0, 0], sizes = [1, 16], strides = [1, 1]} : vector<1x28xf32> to vector<1x16xf32>
    %cst_5 = arith.constant dense<0.000000e+00> : vector<24xf32>
    %13 = vector.multi_reduction <add>, %10, %cst_5 [1] : vector<24x16xf32> to vector<24xf32>
    %14 = vector.shape_cast %13 : vector<24xf32> to vector<24x1xf32>
    %cst_6 = arith.constant 1.600000e+01 : f32
    %15 = vector.broadcast %cst_6 : f32 to vector<24x1xf32>
    %16 = arith.divf %14, %15 : vector<24x1xf32>
    %17 = vector.broadcast %16 : vector<24x1xf32> to vector<24x16xf32>
    %18 = arith.subf %10, %17 : vector<24x16xf32>
    %19 = arith.mulf %18, %18 : vector<24x16xf32>
    %cst_7 = arith.constant dense<0.000000e+00> : vector<24xf32>
    %20 = vector.multi_reduction <add>, %19, %cst_7 [1] : vector<24x16xf32> to vector<24xf32>
    %21 = vector.shape_cast %20 : vector<24xf32> to vector<24x1xf32>
    %cst_8 = arith.constant 1.600000e+01 : f32
    %22 = vector.broadcast %cst_8 : f32 to vector<24x1xf32>
    %23 = arith.divf %21, %22 : vector<24x1xf32>
    %24 = vector.broadcast %16 : vector<24x1xf32> to vector<24x16xf32>
    %25 = arith.subf %10, %24 : vector<24x16xf32>
    %cst_9 = arith.constant 9.99999974E-6 : f32
    %26 = vector.broadcast %cst_9 : f32 to vector<24x1xf32>
    %27 = arith.addf %23, %26 : vector<24x1xf32>
    %28 = math.rsqrt %27 : vector<24x1xf32>
    %29 = vector.broadcast %28 : vector<24x1xf32> to vector<24x16xf32>
    %30 = arith.mulf %25, %29 : vector<24x16xf32>
    %31 = vector.broadcast %11 : vector<1x16xf32> to vector<24x16xf32>
    %32 = arith.mulf %30, %31 : vector<24x16xf32>
    %33 = vector.broadcast %12 : vector<1x16xf32> to vector<24x16xf32>
    %34 = arith.addf %32, %33 : vector<24x16xf32>
    %cst_10 = arith.constant 5.000000e-01 : f32
    %35 = vector.broadcast %cst_10 : f32 to vector<24x16xf32>
    %36 = arith.mulf %35, %34 : vector<24x16xf32>
    %cst_11 = arith.constant 0.707106769 : f32
    %37 = vector.broadcast %cst_11 : f32 to vector<24x16xf32>
    %38 = arith.mulf %34, %37 : vector<24x16xf32>
    %39 = math.erf %38 : vector<24x16xf32>
    %cst_12 = arith.constant 1.000000e+00 : f32
    %40 = vector.broadcast %cst_12 : f32 to vector<24x16xf32>
    %41 = arith.addf %40, %39 : vector<24x16xf32>
    %42 = arith.mulf %36, %41 : vector<24x16xf32>
    %43 = vector.extract_strided_slice %9 {offsets = [0, 16], sizes = [24, 8], strides = [1, 1]} : vector<24x28xf32> to vector<24x8xf32>
    %44 = vector.extract_strided_slice %3 {offsets = [0, 16], sizes = [1, 8], strides = [1, 1]} : vector<1x28xf32> to vector<1x8xf32>
    %45 = vector.extract_strided_slice %4 {offsets = [0, 16], sizes = [1, 8], strides = [1, 1]} : vector<1x28xf32> to vector<1x8xf32>
    %cst_13 = arith.constant dense<0.000000e+00> : vector<24xf32>
    %46 = vector.multi_reduction <add>, %43, %cst_13 [1] : vector<24x8xf32> to vector<24xf32>
    %47 = vector.shape_cast %46 : vector<24xf32> to vector<24x1xf32>
    %cst_14 = arith.constant 8.000000e+00 : f32
    %48 = vector.broadcast %cst_14 : f32 to vector<24x1xf32>
    %49 = arith.divf %47, %48 : vector<24x1xf32>
    %50 = vector.broadcast %49 : vector<24x1xf32> to vector<24x8xf32>
    %51 = arith.subf %43, %50 : vector<24x8xf32>
    %52 = arith.mulf %51, %51 : vector<24x8xf32>
    %cst_15 = arith.constant dense<0.000000e+00> : vector<24xf32>
    %53 = vector.multi_reduction <add>, %52, %cst_15 [1] : vector<24x8xf32> to vector<24xf32>
    %54 = vector.shape_cast %53 : vector<24xf32> to vector<24x1xf32>
    %cst_16 = arith.constant 8.000000e+00 : f32
    %55 = vector.broadcast %cst_16 : f32 to vector<24x1xf32>
    %56 = arith.divf %54, %55 : vector<24x1xf32>
    %57 = vector.broadcast %49 : vector<24x1xf32> to vector<24x8xf32>
    %58 = arith.subf %43, %57 : vector<24x8xf32>
    %cst_17 = arith.constant 9.99999974E-6 : f32
    %59 = vector.broadcast %cst_17 : f32 to vector<24x1xf32>
    %60 = arith.addf %56, %59 : vector<24x1xf32>
    %61 = math.rsqrt %60 : vector<24x1xf32>
    %62 = vector.broadcast %61 : vector<24x1xf32> to vector<24x8xf32>
    %63 = arith.mulf %58, %62 : vector<24x8xf32>
    %64 = vector.broadcast %44 : vector<1x8xf32> to vector<24x8xf32>
    %65 = arith.mulf %63, %64 : vector<24x8xf32>
    %66 = vector.broadcast %45 : vector<1x8xf32> to vector<24x8xf32>
    %67 = arith.addf %65, %66 : vector<24x8xf32>
    %cst_18 = arith.constant 5.000000e-01 : f32
    %68 = vector.broadcast %cst_18 : f32 to vector<24x8xf32>
    %69 = arith.mulf %68, %67 : vector<24x8xf32>
    %cst_19 = arith.constant 0.707106769 : f32
    %70 = vector.broadcast %cst_19 : f32 to vector<24x8xf32>
    %71 = arith.mulf %67, %70 : vector<24x8xf32>
    %72 = math.erf %71 : vector<24x8xf32>
    %cst_20 = arith.constant 1.000000e+00 : f32
    %73 = vector.broadcast %cst_20 : f32 to vector<24x8xf32>
    %74 = arith.addf %73, %72 : vector<24x8xf32>
    %75 = arith.mulf %69, %74 : vector<24x8xf32>
    %76 = vector.extract_strided_slice %9 {offsets = [0, 24], sizes = [24, 4], strides = [1, 1]} : vector<24x28xf32> to vector<24x4xf32>
    %cst_21 = arith.constant 5.000000e-01 : f32
    %77 = vector.broadcast %cst_21 : f32 to vector<24x4xf32>
    %78 = arith.mulf %77, %76 : vector<24x4xf32>
    %cst_22 = arith.constant 0.707106769 : f32
    %79 = vector.broadcast %cst_22 : f32 to vector<24x4xf32>
    %80 = arith.mulf %76, %79 : vector<24x4xf32>
    %81 = math.erf %80 : vector<24x4xf32>
    %cst_23 = arith.constant 1.000000e+00 : f32
    %82 = vector.broadcast %cst_23 : f32 to vector<24x4xf32>
    %83 = arith.addf %82, %81 : vector<24x4xf32>
    %84 = arith.mulf %78, %83 : vector<24x4xf32>
    %85 = tpu.concatenate %42, %75, %84 in 1 : vector<24x16xf32>, vector<24x8xf32>, vector<24x4xf32> -> vector<24x28xf32>
    %c0_24 = arith.constant 0 : index
    %c0_25 = arith.constant 0 : index
    %86 = vector.load %arg3[%c0_24, %c0_25] : memref<28x8xf32, #tpu.memory_space<vmem>>, vector<28x8xf32>
    %cst_26 = arith.constant dense<0.000000e+00> : vector<24x8xf32>
    %87 = tpu.matmul %85, %86, %cst_26 {dimension_numbers = #tpu.dot_dimension_numbers<[1], [0], [0], [1], [0, 0, 1, 1], [], []>} : vector<24x28xf32>, vector<28x8xf32>, vector<24x8xf32> -> vector<24x8xf32>
    %88 = vector.broadcast %5 : vector<1x8xf32> to vector<24x8xf32>
    %89 = arith.addf %87, %88 : vector<24x8xf32>
    %90 = tpu.iota {dimensions = array<i32: 1>} : vector<24x8xi32>
    %c2_i32 = arith.constant 2 : i32
    %91 = vector.broadcast %c2_i32 : i32 to vector<24x8xi32>
    %92 = arith.cmpi sge, %90, %91 : vector<24x8xi32>
    %c6_i32 = arith.constant 6 : i32
    %93 = vector.broadcast %c6_i32 : i32 to vector<24x8xi32>
    %94 = arith.cmpi slt, %90, %93 : vector<24x8xi32>
    %95 = arith.andi %92, %94 : vector<24x8xi1>
    %96 = arith.negf %89 : vector<24x8xf32>
    %97 = math.exp %96 : vector<24x8xf32>
    %cst_27 = arith.constant 1.000000e+00 : f32
    %98 = vector.broadcast %cst_27 : f32 to vector<24x8xf32>
    %99 = arith.addf %98, %97 : vector<24x8xf32>
    %100 = arith.divf %98, %99 : vector<24x8xf32>
    %101 = arith.select %95, %100, %89 : vector<24x8xi1>, vector<24x8xf32>
    %c0_28 = arith.constant 0 : index
    %c0_29 = arith.constant 0 : index
    %102 = vector.load %arg5[%c0_28, %c0_29] : memref<24x8xf32, #tpu.memory_space<vmem>>, vector<24x8xf32>
    tpu.vector_store %arg5[%c0_28, %c0_29], %101 {strides = array<i32>} : memref<24x8xf32, #tpu.memory_space<vmem>>, vector<24x8xf32>,
    return
  }
  func.func @transform_0(%arg0: i32) -> (i32, i32) {
    %c0_i32 = arith.constant 0 : i32
    %c0_i32_0 = arith.constant 0 : i32
    return %arg0, %c0_i32 : i32, i32
  }
  func.func @transform_1(%arg0: i32) -> (i32, i32) {
    %c0_i32 = arith.constant 0 : i32
    %c0_i32_0 = arith.constant 0 : i32
    %c0_i32_1 = arith.constant 0 : i32
    return %c0_i32, %c0_i32_0 : i32, i32
  }
  func.func @transform_2(%arg0: i32) -> (i32, i32) {
    %c0_i32 = arith.constant 0 : i32
    %c0_i32_0 = arith.constant 0 : i32
    %c0_i32_1 = arith.constant 0 : i32
    return %c0_i32, %c0_i32_0 : i32, i32
  }
  func.func @transform_3(%arg0: i32) -> (i32, i32) {
    %c0_i32 = arith.constant 0 : i32
    %c0_i32_0 = arith.constant 0 : i32
    %c0_i32_1 = arith.constant 0 : i32
    return %c0_i32, %c0_i32_0 : i32, i32
  }
  func.func @transform_4(%arg0: i32) -> (i32, i32) {
    %c0_i32 = arith.constant 0 : i32
    %c0_i32_0 = arith.constant 0 : i32
    return %arg0, %c0_i32 : i32, i32
  }
}

</mosaic_0001>

<bundles_post_ra>
// kernel: tpu_custom_call.1
= control target key start
LH: loop header
LB: loop body
LE: loop exit
PB: predicated region body
PF: predicated region fallthrough
CT: control target
= control target key end

     0   :  { %9 = vsyncpa [#allocation3], 0  ;;  %s592_s15 = smov [#allocation2]   ;;  %s777_s0 = inlined_call_operand.hbm [shape: f32[24,32], index: 0, kind: input, shape index: {}]   ;;  %s778_s1 = inlined_call_operand.vmem [shape: f32[32,28], index: 1, kind: input, shape index: {}]   ;;  %s779_s2 = inlined_call_operand.vmem [shape: f32[28,8], index: 2, kind: input, shape index: {}]   ;;  %s780_s3 = inlined_call_operand.vmem [shape: f32[4,28], index: 3, kind: input, shape index: {}]   ;;  %s781_s4 = inlined_call_operand.vmem [shape: f32[24,8], index: 4, kind: output, shape index: {}]  }
   0x1   :  { %s15_s16 = sshll.u32 %s592_s15, 4  ;;  %s568_s19 = scalar_lea.hbm %s777_s0, 384  ;;  %s16_s16 = int_to_ptr.vmem [resolvable:$true] %s15_s16 }
   0x2   :  { %p569_p0 = scmp.ne.s32.totalorder %s777_s0, %s568_s19  ;;  %p572_p1 = scmp.lt.u32.totalorder %s568_s19, %s777_s0 }
   0x4   :  { %p574_p2 = pnand %p572_p1, %p569_p0 }
   0x6   :  { %577 = shalt.err (!%p574_p2)
}
   0x7   :  { %s578_s24 = scalar_lea.vmem %s16_s16, 384  ;;  %p583_p4 = scmp.lt.s32.totalorder %s16_s16, %s16_s16 }
   0x8   :  { %p579_p3 = scmp.ne.s32.totalorder %s16_s16, %s578_s24  ;;  %p584_p5 = scmp.lt.s32.totalorder %s578_s24, %s578_s24 }
   0xa   :  { %p585_p6 = por %p584_p5, %p583_p4 }
   0xc   :  { %p586_p7 = pnand %p585_p6, %p579_p3 }
   0xe   :  { %589 = shalt.err (!%p586_p7)
}
   0xf   :  { %s593_s25 = smov 128   ;;  %s594_s26 = smov 8  }
  0x10   :  { %21 = dma.hbm_to_vmem [thread:$0]  %s777_s0, 384, %s16_s16, [#allocation3], %s593_s25, %s593_s25, %s594_s26  }
  0x11   :  { %590 = dma.done.wait [#allocation3], 384  }
  0x12   :  { %591 = vsyncadd [#allocation3], 4294966912  ;;  %v595_v0 = vmov 0.0|0.0   ;;  %vm596_vm0 = vmmov 0   ;;  %v597_v1 = vmov 0.0   ;;  %v35_v2 = vld [vmem:[%s778_s1] sm:$0xff]  ;;  %v39_v11 = vlaneseq }
  0x13   :  { %505 = vmatprep.subr.bf16.mxu0 %v595_v0  ;;  %479 = vmatprep.mubr.msk.f32.mxu0 %vm596_vm0, %v597_v1  ;;  %v36_v3 = vld [vmem:[%s778_s1 + $0x8] sm:$0xff]  ;;  %v37_v4 = vld [vmem:[%s778_s1 + $0x10] sm:$0xff]  ;;  %v38_v6 = vld [vmem:[%s778_s1 + $0x18] sm:$0xff]  ;;  %vm43_vm1 = vcmask 261120   ;;  %s598_s11 = smov 112   ;;  %vm215_vm2 = vcmask 64512  }
  0x14   :  { %511 = vmatprep.subr.bf16.mxu1 %v595_v0  ;;  %496 = vmatprep.mubr.msk.f32.mxu1 %vm596_vm0, %v597_v1  ;;  %v506_v5 = vpack.c.bf16 %v36_v3, %v35_v2  ;;  %v509_v7 = vpack.c.bf16 %v38_v6, %v37_v4  ;;  %v31_v8 = vld [vmem:[#allocation2] sm:$0xff]  ;;  %v32_v9 = vld [vmem:[#allocation2 + $0x8] sm:$0xff]  ;;  %v33_v10 = vld [vmem:[#allocation2 + $0x10] sm:$0xff]  ;;  %v661_v12 = vshrl.u32 %v39_v11, 7  ;;  %vm133_vm3 = vcmask 130048  }
  0x15   :  { %v667_v14 = vld [vmem:[%s780_s3] sm:$0xf]  ;;  %v312_v6 = vld [vmem:[%s779_s2 + $0x8] sm:$0xff]  ;;  %vm329_vm4 = vcmask 1043456   ;;  %vm599_vm5 = vmmov 1   ;;  %vm307_vm7 = vcmask 195584  }
  0x16   :  { %507 = vmatpush3.bf16.msra.mxu0 %v506_v5  ;;  %v41_v13 = vsub.s32 0, %v661_v12  ;;  %v311_v5 = vld [vmem:[%s779_s2] sm:$0xff]  ;;  %vm516_vm6 = vmpackc.low %vm329_vm4, %vm599_vm5  ;;  %vm319_vm8 = vcmask 228352  }
  0x17   :  { %508 = vmatprep.subr.bf16.mxu0 %v595_v0 }
  0x18   :  { %v42_v15 = vrot.slane %v667_v14, %v41_v13 }
  0x1a   :  { %510 = vmatpush3.bf16.msra.mxu0 %v509_v7  ;;  %v313_v7 = vld [vmem:[%s779_s2 + $0x10] sm:$0xff] }
  0x1d   :  { %480 = vmatmul.mubr.msk.f32.vlgmr.msra.gmra.mrb[0].mxu0 %vm43_vm1, %v31_v8  ;;  %v512_v8 = vpack.c.bf16 %v312_v6, %v311_v5 }
  0x1e   :  { %482 = vmatprep.mubr.msk.f32.mxu0 %vm596_vm0, %v597_v1 }
  0x1f   :  { %513 = vmatpush3.bf16.msra.mxu1 %v512_v8 }
  0x20   :  { %514 = vmatprep.subr.bf16.mxu1 %v595_v0 }
  0x21   :  { %483 = vmatmul.mubr.msk.f32.gmra.mrb[2].mxu0 %vm43_vm1, %v32_v9  ;;  %v314_v9 = vld [vmem:[%s779_s2 + $0x18] sm:$0xf] }
  0x22   :  { %485 = vmatprep.mubr.msk.f32.mxu0 %vm596_vm0, %v597_v1 }
  0x25   :  { %486 = vmatmul.mubr.msk.f32.gmra.mrb[4].mxu0 %vm43_vm1, %v33_v10  ;;  %v515_v10 = vpack.c.bf16 %v314_v9, %v313_v7 }
  0x27   :  { %517 = vmatpush3.bf16.msk.msra.mxu1 %vm516_vm6, %v515_v10 }
  0xf0   :  { %v119_v16 = vpop.f32.mrb[0].mxu0 }
  0xf1   :  { %v670_v17 = vadd.f32 %v119_v16, %v42_v15  ;;  %v481_v18 = vpop.f32.mrb[1].mxu0 }
  0xf3   :  { %206 = vrot.lane.b32.xlu0 %v670_v17, %s598_s11  ;;  %v134_v29 = vsel %vm133_vm3, %v670_v17, 0.0 }
  0xf4   :  { %v124_v19 = vpop.f32.mrb[2].mxu0 }
  0xf5   :  { %v674_v20 = vadd.f32 %v124_v19, %v42_v15  ;;  %v484_v21 = vpop.f32.mrb[3].mxu0 }
  0xf7   :  { %208 = vrot.lane.b32.xlu0 %v674_v20, %s598_s11  ;;  %v137_v33 = vsel %vm133_vm3, %v674_v20, 0.0 }
  0xf8   :  { %v129_v22 = vpop.f32.mrb[4].mxu0 }
  0xf9   :  { %v678_v23 = vadd.f32 %v129_v22, %v42_v15  ;;  %v487_v24 = vpop.f32.mrb[5].mxu0  ;;  %v176_v22 = vsub.s32 1, %v661_v12 }
  0xfb   :  { %210 = vrot.lane.b32.xlu1 %v678_v23, %s598_s11  ;;  %v140_v32 = vsel %vm133_vm3, %v678_v23, 0.0  ;;  %v177_v0 = vrot.slane %v667_v14, %v176_v22 }
 0x165   :  { %v207_v25 = vpop.permute.xlu0 %206 }
 0x166   :  { %v216_v26 = vsel %vm215_vm2, %v207_v25, 0.0 }
 0x167   :  { %217 = vadd.xlane.f32.xlu1 %v216_v26 }
 0x169   :  { %v209_v27 = vpop.permute.xlu0 %208 }
 0x16a   :  { %v219_v28 = vsel %vm215_vm2, %v209_v27, 0.0 }
 0x16b   :  { %220 = vadd.xlane.f32.xlu0 %v219_v28  ;;  %135 = vadd.xlane.f32.xlu1 %v134_v29  ;;  %v183_v29 = vsub.s32 2, %v661_v12 }
 0x16d   :  { %v211_v30 = vpop.permute.xlu1 %210 }
 0x16e   :  { %v222_v31 = vsel %vm215_vm2, %v211_v30, 0.0 }
 0x16f   :  { %223 = vadd.xlane.f32.xlu0 %v222_v31  ;;  %141 = vadd.xlane.f32.xlu1 %v140_v32 }
 0x173   :  { %138 = vadd.xlane.f32.xlu0 %v137_v33 }
 0x1f4   :  { %v218_v34 = vpop.xlane.xlu1 %217 }
 0x1f5   :  { %v226_v35 = vmul.f32 0.125, %v218_v34 }
 0x1f7   :  { %v692_v36 = vsub.f32 %v670_v17, %v226_v35 }
 0x1f8   :  { %v221_v37 = vpop.xlane.xlu0 %220  ;;  %v136_v46 = vpop.xlane.xlu1 %135 }
 0x1f9   :  { %v227_v38 = vmul.f32 0.125, %v221_v37  ;;  %v232_v39 = vmul.f32 %v692_v36, %v692_v36  ;;  %v144_v47 = vmul.f32 0.0625, %v136_v46 }
 0x1fb   :  { %v697_v40 = vsub.f32 %v674_v20, %v227_v38  ;;  %238 = vrot.lane.b32.xlu0 %v232_v39, %s598_s11  ;;  %v147_v49 = vsub.f32 %v670_v17, %v144_v47  ;;  %v184_v39 = vrot.slane %v667_v14, %v183_v29 }
 0x1fc   :  { %v224_v41 = vpop.xlane.xlu0 %223  ;;  %v142_v56 = vpop.xlane.xlu1 %141 }
 0x1fd   :  { %v228_v42 = vmul.f32 0.125, %v224_v41  ;;  %v233_v43 = vmul.f32 %v697_v40, %v697_v40  ;;  %v150_v52 = vmul.f32 %v147_v49, %v147_v49  ;;  %v146_v57 = vmul.f32 0.0625, %v142_v56 }
 0x1ff   :  { %v703_v44 = vsub.f32 %v678_v23, %v228_v42  ;;  %240 = vrot.lane.b32.xlu1 %v233_v43, %s598_s11  ;;  %v153_v53 = vsel %vm133_vm3, %v150_v52, 0.0  ;;  %v714_v58 = vsub.f32 %v678_v23, %v146_v57 }
 0x200   :  { %v139_v48 = vpop.xlane.xlu0 %138 }
 0x201   :  { %v234_v45 = vmul.f32 %v703_v44, %v703_v44  ;;  %v145_v50 = vmul.f32 0.0625, %v139_v48  ;;  %v152_v61 = vmul.f32 %v714_v58, %v714_v58 }
 0x203   :  { %242 = vrot.lane.b32.xlu1 %v234_v45, %s598_s11  ;;  %v148_v51 = vsub.f32 %v674_v20, %v145_v50  ;;  %v159_v63 = vsel %vm133_vm3, %v152_v61, 0.0  ;;  %v293_v61 = vmul.f32 0.70710677, %v674_v20 }
 0x205   :  { %v151_v54 = vmul.f32 %v148_v51, %v148_v51 }
 0x207   :  { %v156_v55 = vsel %vm133_vm3, %v151_v54, 0.0 }
 0x21a   :  { %154 = vadd.xlane.f32.xlu0 %v153_v53 }
 0x21e   :  { %157 = vadd.xlane.f32.xlu0 %v156_v55 }
 0x26d   :  { %v239_v59 = vpop.permute.xlu0 %238 }
 0x26e   :  { %v247_v60 = vsel %vm215_vm2, %v239_v59, 0.0 }
 0x26f   :  { %248 = vadd.xlane.f32.xlu1 %v247_v60 }
 0x271   :  { %v241_v62 = vpop.permute.xlu1 %240 }
 0x272   :  { %v250_v2 = vsel %vm215_vm2, %v241_v62, 0.0 }
 0x273   :  { %160 = vadd.xlane.f32.xlu1 %v159_v63  ;;  %251 = vadd.xlane.f32.xlu0 %v250_v2 }
 0x275   :  { %v243_v3 = vpop.permute.xlu1 %242 }
 0x276   :  { %v253_v4 = vsel %vm215_vm2, %v243_v3, 0.0  ;;  %v294_v3 = vmul.f32 0.70710677, %v678_v23 }
 0x277   :  { %254 = vadd.xlane.f32.xlu0 %v253_v4 }
 0x2a7   :  { %v155_v13 = vpop.xlane.xlu0 %154 }
 0x2a8   :  { %v162_v15 = vmul.f32 0.0625, %v155_v13 }
 0x2aa   :  { %v165_v19 = vadd.f32 1e-05, %v162_v15 }
 0x2ab   :  { %v158_v16 = vpop.xlane.xlu0 %157 }
 0x2ac   :  { %v163_v18 = vmul.f32 0.0625, %v158_v16  ;;  %526 = vrsqrt.f32 %v165_v19 }
 0x2ae   :  { %v166_v21 = vadd.f32 1e-05, %v163_v18 }
 0x2b0   :  { %528 = vrsqrt.f32 %v166_v21 }
 0x2b6   :  { %v527_v25 = vpop.eup %526 }
 0x2b7   :  { %v171_v30 = vmul.f32 %v527_v25, %v147_v49  ;;  %v289_v25 = vmul.f32 0.5, %v670_v17 }
 0x2b9   :  { %v178_v41 = vmul.f32 %v177_v0, %v171_v30 }
 0x2ba   :  { %v529_v28 = vpop.eup %528 }
 0x2bb   :  { %v172_v35 = vmul.f32 %v529_v28, %v148_v51  ;;  %v185_v47 = vadd.f32 %v184_v39, %v178_v41  ;;  %v292_v51 = vmul.f32 0.70710677, %v670_v17 }
 0x2bd   :  { %v179_v45 = vmul.f32 %v177_v0, %v172_v35  ;;  %v191_v52 = vmul.f32 0.70710677, %v185_v47  ;;  %v188_v21 = vmul.f32 0.5, %v185_v47 }
 0x2bf   :  { %v186_v49 = vadd.f32 %v184_v39, %v179_v45 }
 0x2c1   :  { %v192_v55 = vmul.f32 0.70710677, %v186_v49 }
 0x2fc   :  { %v249_v24 = vpop.xlane.xlu1 %248 }
 0x2fd   :  { %v256_v26 = vmul.f32 0.125, %v249_v24 }
 0x2ff   :  { %v259_v27 = vadd.f32 1e-05, %v256_v26 }
 0x300   :  { %v252_v31 = vpop.xlane.xlu0 %251  ;;  %v161_v32 = vpop.xlane.xlu1 %160 }
 0x301   :  { %530 = vrsqrt.f32 %v259_v27  ;;  %v257_v33 = vmul.f32 0.125, %v252_v31  ;;  %v164_v34 = vmul.f32 0.0625, %v161_v32 }
 0x303   :  { %v260_v37 = vadd.f32 1e-05, %v257_v33  ;;  %v167_v38 = vadd.f32 1e-05, %v164_v34  ;;  %v189_v34 = vmul.f32 0.5, %v186_v49 }
 0x304   :  { %v255_v42 = vpop.xlane.xlu0 %254 }
 0x305   :  { %532 = vrsqrt.f32 %v260_v37  ;;  %v258_v43 = vmul.f32 0.125, %v255_v42 }
 0x306   :  { %534 = vrsqrt.f32 %v167_v38 }
 0x307   :  { %v261_v46 = vadd.f32 1e-05, %v258_v43 }
 0x309   :  { %536 = vrsqrt.f32 %v261_v46 }
 0x30a   :  { %538 = verf.f32 %v191_v52 }
 0x30b   :  { %v531_v48 = vpop.eup %530  ;;  %540 = verf.f32 %v292_v51 }
 0x30c   :  { %v265_v50 = vmul.f32 %v531_v48, %v692_v36  ;;  %542 = verf.f32 %v192_v55 }
 0x30e   :  { %v268_v53 = vmul.f32 %v265_v50, %v177_v0 }
 0x30f   :  { %v533_v54 = vpop.eup %532 }
 0x310   :  { %v535_v56 = vpop.eup %534  ;;  %v266_v57 = vmul.f32 %v533_v54, %v697_v40  ;;  %v271_v59 = vadd.f32 %v268_v53, %v184_v39 }
 0x311   :  { %v173_v60 = vmul.f32 %v535_v56, %v714_v58 }
 0x312   :  { %v269_v62 = vmul.f32 %v266_v57, %v177_v0  ;;  %v277_v63 = vmul.f32 0.70710677, %v271_v59  ;;  %v274_v22 = vmul.f32 0.5, %v271_v59  ;;  %v317_v57 = vsub.s32 3, %v661_v12 }
 0x313   :  { %v537_v2 = vpop.eup %536  ;;  %v180_v36 = vmul.f32 %v177_v0, %v173_v60 }
 0x314   :  { %v267_v4 = vmul.f32 %v537_v2, %v703_v44  ;;  %544 = verf.f32 %v277_v63  ;;  %v272_v5 = vadd.f32 %v269_v62, %v184_v39  ;;  %v539_v9 = vpop.eup %538  ;;  %v318_v59 = vrot.slane %v667_v14, %v317_v57 }
 0x315   :  { %546 = verf.f32 %v293_v61  ;;  %v187_v40 = vadd.f32 %v184_v39, %v180_v36  ;;  %v541_v13 = vpop.eup %540  ;;  %v197_v16 = vadd.f32 1.0, %v539_v9  ;;  %v414_v14 = vand.u32 127, %v39_v11 }
 0x316   :  { %v270_v6 = vmul.f32 %v267_v4, %v177_v0  ;;  %v278_v7 = vmul.f32 0.70710677, %v272_v5  ;;  %548 = verf.f32 %v294_v3  ;;  %v543_v15 = vpop.eup %542  ;;  %v298_v19 = vadd.f32 1.0, %v541_v13 }
 0x317   :  { %v193_v8 = vmul.f32 0.70710677, %v187_v40  ;;  %v200_v27 = vmul.f32 %v197_v16, %v188_v21  ;;  %v198_v0 = vadd.f32 1.0, %v543_v15  ;;  %v275_v35 = vmul.f32 0.5, %v272_v5 }
 0x318   :  { %550 = verf.f32 %v278_v7  ;;  %v273_v58 = vadd.f32 %v270_v6, %v184_v39  ;;  %v301_v30 = vmul.f32 %v298_v19, %v289_v25  ;;  %v290_v39 = vmul.f32 0.5, %v674_v20 }
 0x319   :  { %552 = verf.f32 %v193_v8  ;;  %v201_v17 = vmul.f32 %v198_v0, %v189_v34  ;;  %v190_v48 = vmul.f32 0.5, %v187_v40  ;;  %v291_v20 = vmul.f32 0.5, %v678_v23 }
 0x31a   :  { %v279_v10 = vmul.f32 0.70710677, %v273_v58  ;;  %v276_v49 = vmul.f32 0.5, %v273_v58  ;;  %vm415_vm9 = vcmp.ge.s32.totalorder %v414_v14, 2  ;;  %vm416_vm10 = vcmp.lt.s32.totalorder %v414_v14, 6 }
 0x31b   :  { %vm417_vm11 = vmand %vm415_vm9, %vm416_vm10 }
 0x31c   :  { %554 = verf.f32 %v279_v10 }
 0x31e   :  { %v545_v18 = vpop.eup %544 }
 0x31f   :  { %v547_v44 = vpop.eup %546  ;;  %v283_v24 = vadd.f32 1.0, %v545_v18 }
 0x320   :  { %v549_v26 = vpop.eup %548  ;;  %v299_v31 = vadd.f32 1.0, %v547_v44 }
 0x321   :  { %v286_v28 = vmul.f32 %v283_v24, %v274_v22  ;;  %v300_v46 = vadd.f32 1.0, %v549_v26 }
 0x322   :  { %v551_v29 = vpop.eup %550  ;;  %v302_v45 = vmul.f32 %v299_v31, %v290_v39 }
 0x323   :  { %v553_v32 = vpop.eup %552  ;;  %v304_v33 = vsel %vm133_vm3, %v200_v27, %v286_v28  ;;  %v284_v37 = vadd.f32 1.0, %v551_v29  ;;  %v303_v54 = vmul.f32 %v300_v46, %v291_v20 }
 0x324   :  { %v308_v38 = vsel %vm307_vm7, %v304_v33, %v301_v30  ;;  %v199_v42 = vadd.f32 1.0, %v553_v32 }
 0x325   :  { %497 = vmatmul.mubr.msk.f32.vlgmr.msra.gmra.mrb[0].mxu1 %vm319_vm8, %v308_v38  ;;  %v287_v41 = vmul.f32 %v284_v37, %v275_v35 }
 0x326   :  { %v555_v43 = vpop.eup %554  ;;  %499 = vmatprep.mubr.msk.f32.mxu1 %vm596_vm0, %v597_v1  ;;  %v202_v51 = vmul.f32 %v199_v42, %v190_v48 }
 0x327   :  { %v305_v47 = vsel %vm133_vm3, %v201_v17, %v287_v41  ;;  %v285_v50 = vadd.f32 1.0, %v555_v43 }
 0x328   :  { %v309_v52 = vsel %vm307_vm7, %v305_v47, %v302_v45 }
 0x329   :  { %500 = vmatmul.mubr.msk.f32.gmra.mrb[2].mxu1 %vm319_vm8, %v309_v52  ;;  %v288_v53 = vmul.f32 %v285_v50, %v276_v49 }
 0x32a   :  { %502 = vmatprep.mubr.msk.f32.mxu1 %vm596_vm0, %v597_v1 }
 0x32b   :  { %v306_v55 = vsel %vm133_vm3, %v202_v51, %v288_v53 }
 0x32c   :  { %v310_v56 = vsel %vm307_vm7, %v306_v55, %v303_v54 }
 0x32d   :  { %503 = vmatmul.mubr.msk.f32.gmra.mrb[4].mxu1 %vm319_vm8, %v310_v56 }
 0x3f8   :  { %v399_v60 = vpop.f32.mrb[0].mxu1 }
 0x3f9   :  { %v400_v23 = vadd.f32 %v399_v60, %v318_v59  ;;  %v498_v61 = vpop.f32.mrb[1].mxu1 }
 0x3fb   :  { %v454_v62 = vmul.f32 -1.442695, %v400_v23 }
 0x3fc   :  { %v404_v63 = vpop.f32.mrb[2].mxu1 }
 0x3fd   :  { %556 = vpow2.f32 %v454_v62  ;;  %v405_v2 = vadd.f32 %v404_v63, %v318_v59  ;;  %v501_v36 = vpop.f32.mrb[3].mxu1 }
 0x3ff   :  { %v455_v1 = vmul.f32 -1.442695, %v405_v2 }
 0x400   :  { %v409_v3 = vpop.f32.mrb[4].mxu1 }
 0x401   :  { %558 = vpow2.f32 %v455_v1  ;;  %v410_v4 = vadd.f32 %v409_v3, %v318_v59  ;;  %v504_v5 = vpop.f32.mrb[5].mxu1 }
 0x403   :  { %v456_v40 = vmul.f32 -1.442695, %v410_v4 }
 0x405   :  { %560 = vpow2.f32 %v456_v40 }
 0x407   :  { %v557_v6 = vpop.eup %556 }
 0x408   :  { %v427_v7 = vadd.f32 1.0, %v557_v6 }
 0x40a   :  { %562 = vrcp.f32 %v427_v7 }
 0x40b   :  { %v559_v12 = vpop.eup %558 }
 0x40c   :  { %v428_v8 = vadd.f32 1.0, %v559_v12 }
 0x40e   :  { %564 = vrcp.f32 %v428_v8 }
 0x40f   :  { %v561_v58 = vpop.eup %560 }
 0x410   :  { %v429_v9 = vadd.f32 1.0, %v561_v58 }
 0x412   :  { %566 = vrcp.f32 %v429_v9 }
 0x414   :  { %v563_v10 = vpop.eup %562 }
 0x415   :  { %v436_v13 = vsel %vm417_vm11, %v563_v10, %v400_v23 }
 0x416   :  { %439 = vst.msk [vmem:[%s781_s4] sm:$0xff] %vm215_vm2, %v436_v13 }
 0x418   :  { %v565_v15 = vpop.eup %564 }
 0x419   :  { %v437_v16 = vsel %vm417_vm11, %v565_v15, %v405_v2 }
 0x41a   :  { %440 = vst.msk [vmem:[%s781_s4 + $0x8] sm:$0xff] %vm215_vm2, %v437_v16 }
 0x41c   :  { %v567_v11 = vpop.eup %566 }
 0x41d   :  { %v438_v18 = vsel %vm417_vm11, %v567_v11, %v410_v4 }
 0x41e   :  { %441 = vst.msk [vmem:[%s781_s4 + $0x10] sm:$0xff] %vm215_vm2, %v438_v18 }
 0x41f   :  { %446 = vsyncpa [#allocation3], 1 }

</bundles_post_ra>
